<compile_context>
chip_gen: v5e
topology: v5e:2x2
jax: 0.10.0
libtpu: 0.0.40
codegen_flags: <defaults>
</compile_context>

<pallas_src>
import jax
import jax.numpy as jnp
from jax import lax
from jax.experimental import pallas as pl
from jax.experimental.pallas import tpu as pltpu

MAX_NORM = 1.0
NORM_EPS = 1e-7  # matches torch.embedding_renorm_


def _round_up(x, m):
    return ((x + m - 1) // m) * m


# ---------------------------------------------------------------------------
# Kernel 1: per-row max_norm renormalization of the embedding table (O(V*D),
# done once per call instead of once per token).
# ---------------------------------------------------------------------------
def _renorm_kernel(w_ref, out_ref):
    w = w_ref[...].astype(jnp.float32)
    norm = jnp.sqrt(jnp.sum(w * w, axis=-1, keepdims=True))
    scale = jnp.where(norm > MAX_NORM, MAX_NORM / (norm + NORM_EPS), jnp.float32(1.0))
    out_ref[...] = (w * scale).astype(out_ref.dtype)


def _renormalize_table(table_padded):
    v_pad, d = table_padded.shape
    # Token-encoder vocabularies are small; a single full-table block is fine.
    return pl.pallas_call(
        _renorm_kernel,
        out_shape=jax.ShapeDtypeStruct((v_pad, d), table_padded.dtype),
        grid=(1,),
        in_specs=[pl.BlockSpec((v_pad, d), lambda i: (0, 0))],
        out_specs=pl.BlockSpec((v_pad, d), lambda i: (0, 0)),
        compiler_params=pltpu.CompilerParams(dimension_semantics=("arbitrary",)),
    )(table_padded)


# ---------------------------------------------------------------------------
# Kernel 2: vectorized gather over a tile of TILE_T tokens.
#   ids_ref : (1, Tq, P) int32, ids pre-offset by k*V_pad for lane group k
#   wblk_ref: (P*V_pad, P*D) block-diagonal renormalized table (VMEM-resident,
#             constant index_map -> fetched once)
#   out_ref : (Tq, P*D) lane-dense packed output (P tokens per 128-wide row)
# ---------------------------------------------------------------------------
def _gather_kernel(ids_ref, wblk_ref, out_ref):
    ids = ids_ref[0]                      # (Tq, P) int32
    tq, p = ids.shape
    pv = wblk_ref.shape[0]
    col = lax.broadcasted_iota(jnp.int32, (tq, pv), 1)
    # Offset ids of different lane groups live in disjoint [k*V, (k+1)*V) ranges,
    # so summing the per-group one-hots gives a 0/1 blocked one-hot matrix.
    onehot = (ids[:, 0:1] == col).astype(wblk_ref.dtype)
    for k in range(1, p):                 # P <= 4, unrolled
        onehot = onehot + (ids[:, k:k + 1] == col).astype(wblk_ref.dtype)
    acc = jnp.dot(onehot, wblk_ref[...], preferred_element_type=jnp.float32)
    out_ref[...] = acc.astype(out_ref.dtype)


# ---------------------------------------------------------------------------
# Jitted core (no host syncs).
# ---------------------------------------------------------------------------
@jax.jit
def _token_encoder_core(ids, table):
    orig_shape = ids.shape
    v, d = table.shape
    n = ids.size
    flat_ids = ids.reshape(n).astype(jnp.int32)
    itemsize = jnp.dtype(table.dtype).itemsize

    # Pack P tokens per 128-lane output row when D < 128 (lane-dense stores).
    p = 128 // d if (d < 128 and 128 % d == 0) else 1
    lane = p * d

    # Pad vocab rows to a sublane multiple (zero rows: norm 0 -> scale 1 -> zeros).
    v_pad = _round_up(v, 8)
    table_p = table if v_pad == v else jnp.pad(table, ((0, v_pad - v), (0, 0)))

    # 1) renormalize each table row once (Pallas kernel).
    w_scaled = _renormalize_table(table_p)

    # 2) block-diagonal weight: one (Tq, P*V) @ (P*V, P*D) matmul emits P tokens
    #    packed into a single 128-wide row. Pure layout plumbing in the wrapper.
    if p > 1:
        wblk = jnp.zeros((p * v_pad, p * d), dtype=table.dtype)
        for k in range(p):
            wblk = wblk.at[k * v_pad:(k + 1) * v_pad, k * d:(k + 1) * d].set(w_scaled)
    else:
        wblk = w_scaled

    # Token tile sizing: big tiles amortize the ~0.35us/step overhead; cap so the
    # in-kernel one-hot tile stays well inside VMEM on all generations (v7x: 64 MiB).
    base = 8 * p                                   # output rows stay sublane-aligned
    tile_t = min(2048, _round_up(n, base))
    onehot_budget = 4 * 1024 * 1024
    max_tile = max(base, (onehot_budget // (4 * v_pad)) // base * base)
    tile_t = max(base, min(tile_t, max_tile))
    g = -(-n // tile_t)
    n_pad = g * tile_t
    tq = tile_t // p

    ids_p = jnp.pad(flat_ids, (0, n_pad - n))      # pad with id 0 (in-range), sliced off later
    ids3 = ids_p.reshape(g, tq, p) + (jnp.arange(p, dtype=jnp.int32) * v_pad)[None, None, :]

    vmem_bytes = (wblk.shape[0] * wblk.shape[1] * itemsize        # resident table
                  + 2 * (tq * p * 4 + tq * lane * itemsize)       # double-buffered ids/out
                  + tq * p * v_pad * 4)                           # one-hot tile
    vmem_limit = int(min(max(2 * vmem_bytes, 16 * 1024 * 1024), 48 * 1024 * 1024))

    out_packed = pl.pallas_call(
        _gather_kernel,
        out_shape=jax.ShapeDtypeStruct((g * tq, lane), table.dtype),
        grid=(g,),
        in_specs=[
            pl.BlockSpec((1, tq, p), lambda t: (t, 0, 0)),            # ids tile
            pl.BlockSpec((p * v_pad, lane), lambda t: (0, 0)),        # table: VMEM-resident
        ],
        out_specs=pl.BlockSpec((tq, lane), lambda t: (t, 0)),
        compiler_params=pltpu.CompilerParams(
            dimension_semantics=("parallel",),     # v7x: shard token tiles across both TCs
            vmem_limit_bytes=vmem_limit,
        ),
    )(ids3, wblk)

    # Unpack: row-major reshape (G*Tq, P*D) -> (N_pad, D) recovers token-major order.
    out = out_packed.reshape(n_pad, d)[:n]
    return out.reshape(*orig_shape, d)


def token_encoder_forward(ids, table, num_embeddings, validate=True):
    """Pallas-backed forward of TokenEncoder."""
    if validate:
        # Mirror the PyTorch raise-paths eagerly (concrete inputs only); under
        # jit the check is skipped -- the one-hot gather is OOB-safe regardless
        # (out-of-range ids simply produce zero vectors, never an OOB access).
        try:
            max_id = int(jnp.max(ids))
        except jax.errors.ConcretizationTypeError:
            max_id = None
        if max_id is not None and max_id >= num_embeddings:
            raise Exception(f"found {max_id}")
        # ids are integer typed -> the non-finite check is trivially satisfied.
    return _token_encoder_core(ids, table)


def _reference_forward(ids, table):
    rows = table[ids]                                              # (B, S, D)
    norm = jnp.sqrt(jnp.sum(rows * rows, axis=-1, keepdims=True))
    scale = jnp.where(norm > MAX_NORM, MAX_NORM / (norm + NORM_EPS), 1.0)
    return rows * scale


if __name__ == "__main__":
    num_embeddings = 16
    embedding_dim = 32
    B, S = 2, 8

    key = jax.random.PRNGKey(0)
    k_w, k_ids = jax.random.split(key)

    # Deterministic synthetic parameters (nn.Embedding weight ~ N(0, 1)).
    table = jax.random.normal(k_w, (num_embeddings, embedding_dim), dtype=jnp.float32)
    ids = jax.random.randint(k_ids, (B, S), 0, num_embeddings, dtype=jnp.int32)

    out = token_encoder_forward(ids, table, num_embeddings)
    out = jax.block_until_ready(out)

    ref = _reference_forward(ids, table)
    assert out.shape == (B, S, embedding_dim)
    assert jnp.allclose(out, ref, atol=1e-5, rtol=1e-5)

    print("KERNEL_OK")
</pallas_src>

<mosaic_0001>
module attributes {stable_mosaic.version = 11 : i64} {
  func.func @_renorm_kernel(%arg0: i32, %arg1: memref<16x32xf32, #tpu.memory_space<vmem>>, %arg2: memref<16x32xf32, #tpu.memory_space<vmem>>) attributes {dimension_semantics = [#tpu.dimension_semantics<arbitrary>], iteration_bounds = array<i64: 1>, scalar_prefetch = 0 : i64, scratch_operands = 0 : i64, tpu.core_type = #tpu.core_type<tc>, window_params = [{pipeline_mode = #tpu.pipeline_mode<synchronous>, transform_indices = @transform_0, window_bounds = array<i64: 16, 32>}, {pipeline_mode = #tpu.pipeline_mode<synchronous>, transform_indices = @transform_1, window_bounds = array<i64: 16, 32>}]} {
    %c0 = arith.constant 0 : index
    %c0_0 = arith.constant 0 : index
    %0 = vector.load %arg1[%c0, %c0_0] : memref<16x32xf32, #tpu.memory_space<vmem>>, vector<16x32xf32>
    %1 = arith.mulf %0, %0 : vector<16x32xf32>
    %cst = arith.constant dense<0.000000e+00> : vector<16xf32>
    %2 = vector.multi_reduction <add>, %1, %cst [1] : vector<16x32xf32> to vector<16xf32>
    %3 = vector.shape_cast %2 : vector<16xf32> to vector<16x1xf32>
    %4 = math.sqrt %3 : vector<16x1xf32>
    %cst_1 = arith.constant 1.000000e+00 : f32
    %5 = vector.broadcast %cst_1 : f32 to vector<16x1xf32>
    %6 = arith.cmpf ogt, %4, %5 : vector<16x1xf32>
    %cst_2 = arith.constant 1.000000e-07 : f32
    %7 = vector.broadcast %cst_2 : f32 to vector<16x1xf32>
    %8 = arith.addf %4, %7 : vector<16x1xf32>
    %cst_3 = arith.constant 1.000000e+00 : f32
    %9 = vector.broadcast %cst_3 : f32 to vector<16x1xf32>
    %10 = arith.divf %9, %8 : vector<16x1xf32>
    %cst_4 = arith.constant 1.000000e+00 : f32
    %11 = vector.broadcast %cst_4 : f32 to vector<16x1xf32>
    %12 = arith.select %6, %10, %11 : vector<16x1xi1>, vector<16x1xf32>
    %13 = vector.broadcast %12 : vector<16x1xf32> to vector<16x32xf32>
    %14 = arith.mulf %0, %13 : vector<16x32xf32>
    %c0_5 = arith.constant 0 : index
    %c0_6 = arith.constant 0 : index
    %15 = vector.load %arg2[%c0_5, %c0_6] : memref<16x32xf32, #tpu.memory_space<vmem>>, vector<16x32xf32>
    tpu.vector_store %arg2[%c0_5, %c0_6], %14 {strides = array<i32>} : memref<16x32xf32, #tpu.memory_space<vmem>>, vector<16x32xf32>,
    return
  }
  func.func @transform_0(%arg0: i32) -> (i32, i32) {
    %c0_i32 = arith.constant 0 : i32
    %c0_i32_0 = arith.constant 0 : i32
    %c0_i32_1 = arith.constant 0 : i32
    return %c0_i32, %c0_i32_0 : i32, i32
  }
  func.func @transform_1(%arg0: i32) -> (i32, i32) {
    %c0_i32 = arith.constant 0 : i32
    %c0_i32_0 = arith.constant 0 : i32
    %c0_i32_1 = arith.constant 0 : i32
    return %c0_i32, %c0_i32_0 : i32, i32
  }
}

module attributes {stable_mosaic.version = 11 : i64} {
  func.func @_gather_kernel(%arg0: i32, %arg1: memref<1x8x4xi32, #tpu.memory_space<vmem>>, %arg2: memref<64x128xf32, #tpu.memory_space<vmem>>, %arg3: memref<8x128xf32, #tpu.memory_space<vmem>>) attributes {dimension_semantics = [#tpu.dimension_semantics<parallel>], iteration_bounds = array<i64: 1>, scalar_prefetch = 0 : i64, scratch_operands = 0 : i64, tpu.core_type = #tpu.core_type<tc>, window_params = [{transform_indices = @transform_0, window_bounds = array<i64: 1, 8, 4>}, {pipeline_mode = #tpu.pipeline_mode<synchronous>, transform_indices = @transform_1, window_bounds = array<i64: 64, 128>}, {transform_indices = @transform_2, window_bounds = array<i64: 8, 128>}]} {
    %c0 = arith.constant 0 : index
    %c0_0 = arith.constant 0 : index
    %c0_1 = arith.constant 0 : index
    %0 = vector.load %arg1[%c0, %c0_0, %c0_1] : memref<1x8x4xi32, #tpu.memory_space<vmem>>, vector<1x8x4xi32>
    %1 = vector.shape_cast %0 : vector<1x8x4xi32> to vector<8x4xi32>
    %2 = tpu.iota {dimensions = array<i32: 1>} : vector<8x64xi32>
    %3 = vector.extract_strided_slice %1 {offsets = [0, 0], sizes = [8, 1], strides = [1, 1]} : vector<8x4xi32> to vector<8x1xi32>
    %4 = vector.broadcast %3 : vector<8x1xi32> to vector<8x64xi32>
    %5 = arith.cmpi eq, %4, %2 : vector<8x64xi32>
    %6 = arith.extui %5 : vector<8x64xi1> to vector<8x64xi32>
    %7 = arith.sitofp %6 : vector<8x64xi32> to vector<8x64xf32>
    %8 = vector.extract_strided_slice %1 {offsets = [0, 1], sizes = [8, 1], strides = [1, 1]} : vector<8x4xi32> to vector<8x1xi32>
    %9 = vector.broadcast %8 : vector<8x1xi32> to vector<8x64xi32>
    %10 = arith.cmpi eq, %9, %2 : vector<8x64xi32>
    %11 = arith.extui %10 : vector<8x64xi1> to vector<8x64xi32>
    %12 = arith.sitofp %11 : vector<8x64xi32> to vector<8x64xf32>
    %13 = arith.addf %7, %12 : vector<8x64xf32>
    %14 = vector.extract_strided_slice %1 {offsets = [0, 2], sizes = [8, 1], strides = [1, 1]} : vector<8x4xi32> to vector<8x1xi32>
    %15 = vector.broadcast %14 : vector<8x1xi32> to vector<8x64xi32>
    %16 = arith.cmpi eq, %15, %2 : vector<8x64xi32>
    %17 = arith.extui %16 : vector<8x64xi1> to vector<8x64xi32>
    %18 = arith.sitofp %17 : vector<8x64xi32> to vector<8x64xf32>
    %19 = arith.addf %13, %18 : vector<8x64xf32>
    %20 = vector.extract_strided_slice %1 {offsets = [0, 3], sizes = [8, 1], strides = [1, 1]} : vector<8x4xi32> to vector<8x1xi32>
    %21 = vector.broadcast %20 : vector<8x1xi32> to vector<8x64xi32>
    %22 = arith.cmpi eq, %21, %2 : vector<8x64xi32>
    %23 = arith.extui %22 : vector<8x64xi1> to vector<8x64xi32>
    %24 = arith.sitofp %23 : vector<8x64xi32> to vector<8x64xf32>
    %25 = arith.addf %19, %24 : vector<8x64xf32>
    %c0_2 = arith.constant 0 : index
    %c0_3 = arith.constant 0 : index
    %26 = vector.load %arg2[%c0_2, %c0_3] : memref<64x128xf32, #tpu.memory_space<vmem>>, vector<64x128xf32>
    %cst = arith.constant dense<0.000000e+00> : vector<8x128xf32>
    %27 = tpu.matmul %25, %26, %cst {dimension_numbers = #tpu.dot_dimension_numbers<[1], [0], [0], [1], [0, 0, 1, 1], [], []>} : vector<8x64xf32>, vector<64x128xf32>, vector<8x128xf32> -> vector<8x128xf32>
    %c0_4 = arith.constant 0 : index
    %c0_5 = arith.constant 0 : index
    %28 = vector.load %arg3[%c0_4, %c0_5] : memref<8x128xf32, #tpu.memory_space<vmem>>, vector<8x128xf32>
    tpu.vector_store %arg3[%c0_4, %c0_5], %27 {strides = array<i32>} : memref<8x128xf32, #tpu.memory_space<vmem>>, vector<8x128xf32>,
    return
  }
  func.func @transform_0(%arg0: i32) -> (i32, i32, i32) {
    %c0_i32 = arith.constant 0 : i32
    %c0_i32_0 = arith.constant 0 : i32
    %c0_i32_1 = arith.constant 0 : i32
    return %arg0, %c0_i32, %c0_i32_0 : i32, i32, i32
  }
  func.func @transform_1(%arg0: i32) -> (i32, i32) {
    %c0_i32 = arith.constant 0 : i32
    %c0_i32_0 = arith.constant 0 : i32
    %c0_i32_1 = arith.constant 0 : i32
    return %c0_i32, %c0_i32_0 : i32, i32
  }
  func.func @transform_2(%arg0: i32) -> (i32, i32) {
    %c0_i32 = arith.constant 0 : i32
    %c0_i32_0 = arith.constant 0 : i32
    return %arg0, %c0_i32 : i32, i32
  }
}

</mosaic_0001>

<bundles_post_ra>
// kernel: _token_encoder_core.2
= control target key start
LH: loop header
LB: loop body
LE: loop exit
PB: predicated region body
PF: predicated region fallthrough
CT: control target
= control target key end

     0   :  { %6 = vsyncpa [#allocation3], 0  ;;  %s141_s9 = smov [#allocation2]   ;;  %s142_s11 = smov 128   ;;  %s172_s0 = inlined_call_operand.hbm [shape: f32[16,32], index: 0, kind: input, shape index: {}]   ;;  %s173_s1 = inlined_call_operand.vmem [shape: f32[16,32], index: 1, kind: output, shape index: {}]  }
   0x1   :  { %s11_s8 = sshll.u32 %s172_s0, 4  ;;  %s13_s10 = sshll.u32 %s141_s9, 4  ;;  %s12_s8 = int_to_ptr.hbm [resolvable:$true] %s11_s8  ;;  %s14_s10 = int_to_ptr.vmem [resolvable:$true] %s13_s10 }
   0x2   :  { %s143_s12 = smov 8  }
   0x3   :  { %19 = dma.hbm_to_vmem [thread:$0]  %s12_s8, 256, %s14_s10, [#allocation3], %s142_s11, %s142_s11, %s143_s12  }
   0x4   :  { %139 = dma.done.wait [#allocation3], 256  }
   0x5   :  { %140 = vsyncadd [#allocation3], 4294967040  ;;  %v24_v0 = vld [vmem:[#allocation2] sm:$0xff]  ;;  %vm28_vm0 = vcmask 261120   ;;  %v157_v2 = vld [vmem:[#allocation2 + $0x8] sm:$0xff] }
   0x6   :  { %v26_v1 = vmul.f32 %v24_v0, %v24_v0  ;;  %v27_v4 = vmul.f32 %v157_v2, %v157_v2 }
   0x8   :  { %v29_v3 = vsel %vm28_vm0, %v26_v1, 0.0  ;;  %v32_v5 = vsel %vm28_vm0, %v27_v4, 0.0 }
   0x9   :  { %30 = vadd.xlane.f32.xlu0 %v29_v3 }
  0x11   :  { %33 = vadd.xlane.f32.xlu0 %v32_v5 }
  0x7c   :  { %v31_v6 = vpop.xlane.xlu0 %30 }
  0x7d   :  { %107 = vrsqrt.f32 %v31_v6  ;;  %vm42_vm1 = vcmp.eq.f32.partialorder %v31_v6, inf  ;;  %v45_v18 = vand.u32 2147483648, %v31_v6  ;;  %vm44_vm2 = vcmp.eq.f32.partialorder %v31_v6, 0.0 }
  0x83   :  { %v108_v7 = vpop.eup %107 }
  0x84   :  { %v36_v8 = vmul.f32 %v108_v7, %v31_v6  ;;  %v34_v9 = vpop.xlane.xlu0 %33 }
  0x85   :  { %109 = vrsqrt.f32 %v34_v9  ;;  %vm54_vm3 = vcmp.eq.f32.partialorder %v34_v9, inf  ;;  %v57_v26 = vand.u32 2147483648, %v34_v9  ;;  %vm56_vm4 = vcmp.eq.f32.partialorder %v34_v9, 0.0 }
  0x86   :  { %v37_v10 = vmul.f32 %v108_v7, %v36_v8 }
  0x88   :  { %v38_v11 = vmul.f32 0.5, %v37_v10 }
  0x8a   :  { %v39_v12 = vsub.f32 1.5, %v38_v11 }
  0x8b   :  { %v110_v13 = vpop.eup %109 }
  0x8c   :  { %v40_v14 = vmul.f32 %v108_v7, %v39_v12  ;;  %v48_v15 = vmul.f32 %v110_v13, %v34_v9 }
  0x8e   :  { %v41_v16 = vmul.f32 %v40_v14, %v31_v6  ;;  %v49_v17 = vmul.f32 %v110_v13, %v48_v15 }
  0x90   :  { %v43_v19 = vsel %vm42_vm1, %v31_v6, %v41_v16  ;;  %v50_v20 = vmul.f32 0.5, %v49_v17 }
  0x91   :  { %v46_v21 = vsel %vm44_vm2, %v45_v18, %v43_v19 }
  0x92   :  { %v61_v22 = vadd.f32 1e-07, %v46_v21  ;;  %v51_v23 = vsub.f32 1.5, %v50_v20  ;;  %vm59_vm9 = vcmp.gt.f32.partialorder %v46_v21, 1.0 }
  0x94   :  { %111 = vrcp.f32 %v61_v22  ;;  %v52_v24 = vmul.f32 %v110_v13, %v51_v23  ;;  %v74_v33 = vand.u32 2147483648, %v61_v22  ;;  %v72_v35 = vand.u32 2147483647, %v61_v22 }
  0x95   :  { %vm68_vm6 = vweird.f32 %v61_v22 }
  0x96   :  { %v53_v25 = vmul.f32 %v52_v24, %v34_v9  ;;  %v75_v37 = vor.u32 1.1754944e-38, %v74_v33  ;;  %vm73_vm8 = vcmp.eq.f32.partialorder %v72_v35, 8.507059e+37 }
  0x98   :  { %v55_v27 = vsel %vm54_vm3, %v34_v9, %v53_v25 }
  0x99   :  { %v58_v29 = vsel %vm56_vm4, %v57_v26, %v55_v27 }
  0x9a   :  { %v112_v28 = vpop.eup %111  ;;  %v62_v31 = vadd.f32 1e-07, %v58_v29  ;;  %vm60_vm14 = vcmp.gt.f32.partialorder %v58_v29, 1.0 }
  0x9b   :  { %v64_v30 = vmul.f32 %v112_v28, %v61_v22  ;;  %vm69_vm5 = vweird.f32 %v112_v28 }
  0x9c   :  { %113 = vrcp.f32 %v62_v31  ;;  %vm70_vm7 = vmor %vm68_vm6, %vm69_vm5  ;;  %v89_v45 = vand.u32 2147483648, %v62_v31  ;;  %v87_v47 = vand.u32 2147483647, %v62_v31  ;;  %vm83_vm11 = vweird.f32 %v62_v31 }
  0x9d   :  { %v65_v32 = vsub.f32 1.0, %v64_v30 }
  0x9e   :  { %v90_v49 = vor.u32 1.1754944e-38, %v89_v45  ;;  %vm88_vm13 = vcmp.eq.f32.partialorder %v87_v47, 8.507059e+37 }
  0x9f   :  { %v66_v34 = vmul.f32 %v112_v28, %v65_v32 }
  0xa1   :  { %v67_v36 = vadd.f32 %v112_v28, %v66_v34 }
  0xa2   :  { %v114_v38 = vpop.eup %113 }
  0xa3   :  { %v71_v39 = vsel %vm70_vm7, %v112_v28, %v67_v36  ;;  %v79_v41 = vmul.f32 %v114_v38, %v62_v31  ;;  %vm84_vm10 = vweird.f32 %v114_v38 }
  0xa4   :  { %v76_v40 = vsel %vm73_vm8, %v75_v37, %v71_v39  ;;  %vm85_vm12 = vmor %vm83_vm11, %vm84_vm10 }
  0xa5   :  { %v93_v42 = vsel %vm59_vm9, %v76_v40, 1.0  ;;  %v80_v44 = vsub.f32 1.0, %v79_v41 }
  0xa6   :  { %v95_v43 = vmul.f32 %v93_v42, %v24_v0 }
  0xa7   :  { %v81_v46 = vmul.f32 %v114_v38, %v80_v44 }
  0xa8   :  { %97 = vst.msk [vmem:[%s173_s1] sm:$0xff] %vm28_vm0, %v95_v43 }
  0xa9   :  { %v82_v48 = vadd.f32 %v114_v38, %v81_v46 }
  0xab   :  { %v86_v50 = vsel %vm85_vm12, %v114_v38, %v82_v48 }
  0xac   :  { %v91_v51 = vsel %vm88_vm13, %v90_v49, %v86_v50 }
  0xad   :  { %v94_v52 = vsel %vm60_vm14, %v91_v51, 1.0 }
  0xae   :  { %v96_v53 = vmul.f32 %v94_v52, %v157_v2 }
  0xb0   :  { %98 = vst.msk [vmem:[%s173_s1 + $0x8] sm:$0xff] %vm28_vm0, %v96_v53 }
  0xb1   :  { %103 = vsyncpa [#allocation3], 1 }

// kernel: _token_encoder_core.3
= control target key start
LH: loop header
LB: loop body
LE: loop exit
PB: predicated region body
PF: predicated region fallthrough
CT: control target
= control target key end

     0   :  { %v93_v0 = vmov 0   ;;  %v94_v2 = vmov 2   ;;  %v95_v3 = vmov 1   ;;  %v96_v4 = vmov 3   ;;  %s143_s0 = inlined_call_operand.vmem [shape: s32[1,8,4], index: 0, kind: input, shape index: {}]   ;;  %s144_s1 = inlined_call_operand.vmem [shape: f32[64,128], index: 1, kind: input, shape index: {}]   ;;  %s145_s2 = inlined_call_operand.vmem [shape: f32[8,128], index: 2, kind: output, shape index: {}]  }
   0x1   :  { %88 = vset.pattern.permute.xlu0 %v93_v0  ;;  %v11_v1 = vld [vmem:[%s143_s0] sm:$0xff]  ;;  %90 = vset.pattern.permute.xlu1 %v94_v2  ;;  %v48_v5 = vld [vmem:[%s144_s1 + $0x38] sm:$0xff]  ;;  %v47_v6 = vld [vmem:[%s144_s1 + $0x30] sm:$0xff]  ;;  %v12_v13 = vlaneseq  ;;  %v97_v19 = vmov 0.0   ;;  %vm49_vm4 = vcmask 523264  }
   0x2   :  { %15 = vperm.xlu0 %88, %v11_v1   ;;  %28 = vperm.xlu1 %90, %v11_v1   ;;  %v46_v7 = vld [vmem:[%s144_s1 + $0x28] sm:$0xff]  ;;  %v45_v8 = vld [vmem:[%s144_s1 + $0x20] sm:$0xff]  ;;  %v44_v9 = vld [vmem:[%s144_s1 + $0x18] sm:$0xff] }
   0x3   :  { %61 = vmatpush.msra.mxu0 %v48_v5  ;;  %v43_v10 = vld [vmem:[%s144_s1 + $0x10] sm:$0xff]  ;;  %v42_v11 = vld [vmem:[%s144_s1 + $0x8] sm:$0xff]  ;;  %v41_v12 = vld [vmem:[%s144_s1] sm:$0xff]  ;;  %v13_v16 = vand.u32 127, %v12_v13 }
   0x5   :  { %62 = vmatpush.msra.mxu0 %v47_v6 }
   0x7   :  { %63 = vmatpush.msra.mxu0 %v46_v7 }
   0x9   :  { %64 = vmatpush.msra.mxu0 %v45_v8 }
   0xa   :  { %89 = vset.pattern.permute.xlu0 %v95_v3  ;;  %91 = vset.pattern.permute.xlu1 %v96_v4 }
   0xb   :  { %21 = vperm.xlu0 %89, %v11_v1   ;;  %35 = vperm.xlu1 %91, %v11_v1  }
   0xc   :  { %65 = vmatpush.msra.mxu0 %v44_v9 }
   0xe   :  { %66 = vmatpush.msra.mxu0 %v43_v10 }
  0x10   :  { %67 = vmatpush.msra.mxu0 %v42_v11 }
  0x12   :  { %68 = vmatpush.msra.mxu0 %v41_v12 }
  0x13   :  { %92 = vset.pattern.permute.xlu0 %v96_v4 }
  0x74   :  { %v16_v14 = vpop.permute.xlu0 %15  ;;  %v29_v15 = vpop.permute.xlu1 %28 }
  0x75   :  { %vm17_vm0 = vcmp.eq.s32.totalorder %v16_v14, %v13_v16  ;;  %vm30_vm1 = vcmp.eq.s32.totalorder %v29_v15, %v13_v16 }
  0x76   :  { %v78_v20 = vsel %vm17_vm0, 1.0, %v97_v19  ;;  %v80_v23 = vsel %vm30_vm1, 1.0, %v97_v19 }
  0x7d   :  { %v22_v17 = vpop.permute.xlu0 %21  ;;  %v36_v18 = vpop.permute.xlu1 %35 }
  0x7e   :  { %vm23_vm2 = vcmp.eq.s32.totalorder %v22_v17, %v13_v16  ;;  %vm37_vm3 = vcmp.eq.s32.totalorder %v36_v18, %v13_v16 }
  0x7f   :  { %v79_v21 = vsel %vm23_vm2, 1.0, %v97_v19  ;;  %v81_v24 = vsel %vm37_vm3, 1.0, %v97_v19 }
  0x80   :  { %v26_v22 = vadd.f32 %v79_v21, %v78_v20 }
  0x82   :  { %v33_v25 = vadd.f32 %v80_v23, %v26_v22 }
  0x84   :  { %v40_v26 = vadd.f32 %v81_v24, %v33_v25 }
  0x86   :  { %82 = vmatmul.msk.f32.vlgmr.msra.gmra.mxu0 %vm49_vm4, %v40_v26 }
 0x103   :  { %v70_v27 = vpop.f32.mrf.mxu0 }
 0x104   :  { %73 = vst [vmem:[%s145_s2] sm:$0xff] %v70_v27 }

</bundles_post_ra>
